<compile_context>
chip_gen: v7x
topology: tpu7x:2x2x1
jax: 0.10.0
libtpu: 0.0.40
codegen_flags: <defaults>
</compile_context>

<pallas_src>
import functools

import jax
import jax.numpy as jnp
from jax import lax
from jax.experimental import pallas as pl
from jax.experimental.pallas import tpu as pltpu

_TAPS = tuple((dy, dx) for dy in (-1, 0, 1) for dx in (-1, 0, 1))
_CENTER = _TAPS.index((0, 0))


# --------------------------- roll-direction probe -----------------------------
# Every spatial shift goes through pltpu.roll; probe its rotate convention once
# against jnp.roll so the shift sign is robust across backends/versions.
@functools.lru_cache(maxsize=None)
def _roll_matches_numpy() -> bool:
    def k(x_ref, o_ref):
        o_ref[...] = pltpu.roll(x_ref[...], 1, axis=1)

    x = jnp.arange(8 * 128, dtype=jnp.float32).reshape(8, 128)
    y = pl.pallas_call(
        k, out_shape=jax.ShapeDtypeStruct((8, 128), jnp.float32))(x)
    return bool(jnp.array_equal(y, jnp.roll(x, 1, axis=1)))


def _vmem_limit_bytes():
    """Modest, generation-aware VMEM limit (working set here is < 2 MiB)."""
    need = 16 * 1024 * 1024
    try:
        cap = int(pltpu.get_tpu_info().vmem_capacity_bytes)
        return min(max(need, cap // 4), cap - (16 << 20))
    except Exception:  # pragma: no cover - conservative fallback
        return need


# ------------------------------- Pallas kernel --------------------------------
def _decouple_kernel(x_ref, mask_ref, takel_ref, win_ref, wmain_ref,
                     wlp_ref, whp_ref, wld_ref, whd_ref,
                     woutl_ref, wouth_ref, o_ref, *, H, W, hf, roll_np):
    HW = H * W
    c4 = 4 * hf

    x = x_ref[0]                                        # (dim, HW)

    # per-tap boundary-validity masks (bool, (1, HW)), tap order == _TAPS
    mval = mask_ref[...]                                # (9, HW) f32 0/1
    mvalid = [mval[t:t + 1, :] > 0.5 for t in range(9)]

    def shift(v, dy, dx):
        """y[..., idx] = v[..., idx + dy*W + dx] (wrapped; caller masks wrap)."""
        delta = dy * W + dx
        s = (-delta) % HW if roll_np else delta % HW
        if s == 0:
            return v
        return pltpu.roll(v, s, axis=1)

    def stencil_zero(v, w_ref):
        """3x3 depthwise stencil, zero padding.  v: (C, HW), w_ref: (9, C, 1)."""
        acc = v * w_ref[_CENTER]
        for t, (dy, dx) in enumerate(_TAPS):
            if t == _CENTER:
                continue
            s = jnp.where(mvalid[t], shift(v, dy, dx), 0.0)
            acc = acc + s * w_ref[t]
        return acc

    def avg3x3_replicate(v):
        """Separable 3x3 box mean with replicate padding (4 rolls total)."""
        um, lm, rm, dm = mvalid[1], mvalid[3], mvalid[5], mvalid[7]
        cs = (v + jnp.where(lm, shift(v, 0, -1), v)
                + jnp.where(rm, shift(v, 0, 1), v))
        rs = (cs + jnp.where(um, shift(cs, -1, 0), cs)
                 + jnp.where(dm, shift(cs, 1, 0), cs))
        return rs * (1.0 / 9.0)

    # inconv (1x1, MXU) with mainconv's grouped 2x channel duplication and the
    # depthconv channel permutation folded into the weight host-side.
    a4 = jnp.dot(win_ref[...], x, preferred_element_type=jnp.float32)  # (c4,HW)

    # mainconv (grouped 3x3, zero pad) + relu
    m = jnp.maximum(stencil_zero(a4, wmain_ref), 0.0)

    # avgconv (fixed 1/9, replicate pad) and high-frequency residual
    l = avg3x3_replicate(m)
    h = m - l

    # l/h pointconv (depthwise 3x3, zero pad) + relu
    lp = jnp.maximum(stencil_zero(l, wlp_ref), 0.0)
    hp = jnp.maximum(stencil_zero(h, whp_ref), 0.0)

    # split + cross-concat == per-channel (sublane) select
    take_l = takel_ref[...] > 0.5                        # (c4, 1) bool
    lin = jnp.where(take_l, lp, hp)
    hin = jnp.where(take_l, hp, lp)

    # l/h depthconv (grouped 3x3, 4-in/1-out, zero pad): per-channel FMAs into
    # a c4-wide accumulator; the permuted channel order makes the group
    # reduction a sum of the 4 contiguous hf-row sublane blocks.
    lacc = stencil_zero(lin, wld_ref)
    hacc = stencil_zero(hin, whd_ref)
    l2 = jnp.maximum(lacc[0:hf] + lacc[hf:2 * hf]
                     + lacc[2 * hf:3 * hf] + lacc[3 * hf:4 * hf], 0.0)
    h2 = jnp.maximum(hacc[0:hf] + hacc[hf:2 * hf]
                     + hacc[2 * hf:3 * hf] + hacc[3 * hf:4 * hf], 0.0)

    # outconv (1x1) on cat([l2, h2]) == split matmul + add (MXU)
    y = (jnp.dot(woutl_ref[...], l2, preferred_element_type=jnp.float32)
         + jnp.dot(wouth_ref[...], h2, preferred_element_type=jnp.float32))
    o_ref[0] = y.astype(o_ref.dtype)


# --------------------------------- wrapper -------------------------------------
def decouple_conv_v3(x_nchw, kernel_params):
    (mask, take_l, win, wmain, wlp, whp, wld, whd, woutl, wouth) = kernel_params
    N, C, H, W = x_nchw.shape
    HW = H * W
    hf = woutl.shape[1]
    x = x_nchw.reshape(N, C, HW).astype(jnp.float32)     # free reshape, no transpose

    kern = functools.partial(_decouple_kernel, H=H, W=W, hf=hf,
                             roll_np=_roll_matches_numpy())

    def full(arr):
        nd = arr.ndim
        return pl.BlockSpec(arr.shape, lambda n, _nd=nd: (0,) * _nd)

    consts = (mask, take_l, win, wmain, wlp, whp, wld, whd, woutl, wouth)
    out = pl.pallas_call(
        kern,
        out_shape=jax.ShapeDtypeStruct((N, C, HW), jnp.float32),
        grid_spec=pltpu.PrefetchScalarGridSpec(
            num_scalar_prefetch=0,
            grid=(N,),
            in_specs=[pl.BlockSpec((1, C, HW), lambda n: (n, 0, 0))]
                     + [full(w) for w in consts],
            out_specs=pl.BlockSpec((1, C, HW), lambda n: (n, 0, 0)),
        ),
        compiler_params=pltpu.CompilerParams(
            dimension_semantics=("parallel",),
            vmem_limit_bytes=_vmem_limit_bytes()),
    )(x, *consts)
    return out.reshape(N, C, H, W)                        # free reshape back


# ------------------------ deterministic parameter setup ------------------------
def build_params(key, dim, ffn_expansion_factor=2.66, H=16, W=16):
    hf = int(dim * ffn_expansion_factor)
    c2, c4 = 2 * hf, 4 * hf
    HW = H * W
    ks = jax.random.split(key, 7)
    s = 0.1
    # PyTorch-layout weights (OIHW), bias=False everywhere.
    w_in = jax.random.normal(ks[0], (c2, dim, 1, 1), jnp.float32) * s
    w_main = jax.random.normal(ks[1], (c4, 1, 3, 3), jnp.float32) * s
    w_lp = jax.random.normal(ks[2], (c4, 1, 3, 3), jnp.float32) * s
    w_hp = jax.random.normal(ks[3], (c4, 1, 3, 3), jnp.float32) * s
    w_ld = jax.random.normal(ks[4], (hf, 4, 3, 3), jnp.float32) * s
    w_hd = jax.random.normal(ks[5], (hf, 4, 3, 3), jnp.float32) * s
    w_out = jax.random.normal(ks[6], (dim, c2, 1, 1), jnp.float32) * s
    torch_w = dict(inconv=w_in, mainconv=w_main, l_pointconv=w_lp,
                   h_pointconv=w_hp, l_depthconv=w_ld, h_depthconv=w_hd,
                   outconv=w_out)

    # ---- repack to kernel form (all host-side / free) ----
    # Permuted channel order for every c4-wide tensor: permuted position
    # p = k*hf + g holds the original channel c = 4*g + k, so the 4-in/1-out
    # depthconv group sum is a sum of 4 contiguous hf-row blocks.
    p = jnp.arange(c4)
    g, k = p % hf, p // hf
    c_of_p = 4 * g + k

    # inconv weight with mainconv's interleaved 2x duplication folded in,
    # rows already in permuted order: row p reads inconv output c_of_p // 2.
    win = w_in[:, :, 0, 0][c_of_p // 2]                   # (c4, dim)

    def tapvec(w):            # depthwise (c4, 1, 3, 3) -> (9, c4, 1), permuted
        return jnp.stack([w[c_of_p, 0, dy + 1, dx + 1]
                          for (dy, dx) in _TAPS]).reshape(9, c4, 1)
    wmain, wlp, whp = tapvec(w_main), tapvec(w_lp), tapvec(w_hp)

    def dtapvec(w):           # grouped (hf, 4, 3, 3) -> (9, c4, 1), permuted
        return jnp.stack([w[g, k, dy + 1, dx + 1]
                          for (dy, dx) in _TAPS]).reshape(9, c4, 1)
    wld, whd = dtapvec(w_ld), dtapvec(w_hd)

    # cross-concat select: take-from-l iff the original channel is < c2
    take_l = (c_of_p < c2).astype(jnp.float32).reshape(c4, 1)

    # outconv (1x1) split into the l2 / h2 halves, (dim, hf) each
    wout = w_out[:, :, 0, 0]                              # (dim, c2)
    woutl, wouth = wout[:, :hf], wout[:, hf:]

    # per-tap boundary-validity masks over the flattened spatial dim
    row = jnp.arange(HW) // W
    col = jnp.arange(HW) % W

    def valid(dy, dx):
        vr = jnp.logical_and(row + dy >= 0, row + dy <= H - 1)
        vc = jnp.logical_and(col + dx >= 0, col + dx <= W - 1)
        return jnp.logical_and(vr, vc)

    mask = jnp.stack([valid(dy, dx) for (dy, dx) in _TAPS]).astype(jnp.float32)

    params = (mask, take_l, win, wmain, wlp, whp, wld, whd, woutl, wouth)
    return torch_w, params, hf


# ----------------------------- pure-JAX reference ------------------------------
def ref_forward(x, tw, hf):
    c2, c4 = 2 * hf, 4 * hf

    def conv(x, w, groups, pad):
        return lax.conv_general_dilated(
            x, w, window_strides=(1, 1), padding=[(pad, pad), (pad, pad)],
            dimension_numbers=("NCHW", "OIHW", "NCHW"),
            feature_group_count=groups)

    x1 = conv(x, tw["inconv"], 1, 0)
    x2 = jax.nn.relu(conv(x1, tw["mainconv"], c2, 1))
    w_avg = jnp.full((c4, 1, 3, 3), 1.0 / 9.0, jnp.float32)
    xp = jnp.pad(x2, ((0, 0), (0, 0), (1, 1), (1, 1)), mode="edge")
    l = conv(xp, w_avg, c4, 0)
    h = x2 - l
    l = jax.nn.relu(conv(l, tw["l_pointconv"], c4, 1))
    h = jax.nn.relu(conv(h, tw["h_pointconv"], c4, 1))
    l_tol, l_toh = l[:, :c2], l[:, c2:]
    h_toh, h_tol = h[:, :c2], h[:, c2:]
    l2 = jax.nn.relu(conv(jnp.concatenate([l_tol, h_tol], 1), tw["l_depthconv"], hf, 1))
    h2 = jax.nn.relu(conv(jnp.concatenate([h_toh, l_toh], 1), tw["h_depthconv"], hf, 1))
    return conv(jnp.concatenate([l2, h2], 1), tw["outconv"], 1, 0)


if __name__ == "__main__":
    key = jax.random.PRNGKey(0)
    dim, N, H, W = 4, 2, 16, 16                           # hidden_features = 10
    torch_w, kernel_params, hf = build_params(key, dim, H=H, W=W)
    x = jax.random.normal(jax.random.fold_in(key, 123), (N, dim, H, W), jnp.float32)

    y = decouple_conv_v3(x, kernel_params)
    y = jax.block_until_ready(y)

    y_ref = ref_forward(x, torch_w, hf)
    err = float(jnp.max(jnp.abs(y - y_ref)))
    assert jnp.allclose(y, y_ref, atol=2e-4, rtol=2e-4), f"max abs err = {err}"
    print("KERNEL_OK")
</pallas_src>

<mosaic_0001>
module attributes {stable_mosaic.version = 11 : i64} {
  func.func @k(%arg0: memref<8x128xf32, #tpu.memory_space<vmem>>, %arg1: memref<8x128xf32, #tpu.memory_space<vmem>>) attributes {dimension_semantics = [], scalar_prefetch = 0 : i64, scratch_operands = 0 : i64, tpu.core_type = #tpu.core_type<tc>} {
    %c0 = arith.constant 0 : index
    %c0_0 = arith.constant 0 : index
    %0 = vector.load %arg0[%c0, %c0_0] : memref<8x128xf32, #tpu.memory_space<vmem>>, vector<8x128xf32>
    %c1_i32 = arith.constant 1 : i32
    %1 = tpu.dynamic_rotate %0 by %c1_i32 dim 1 : vector<8x128xf32>, i32 -> vector<8x128xf32>
    %c0_1 = arith.constant 0 : index
    %c0_2 = arith.constant 0 : index
    %2 = vector.load %arg1[%c0_1, %c0_2] : memref<8x128xf32, #tpu.memory_space<vmem>>, vector<8x128xf32>
    tpu.vector_store %arg1[%c0_1, %c0_2], %1 {strides = array<i32>} : memref<8x128xf32, #tpu.memory_space<vmem>>, vector<8x128xf32>,
    return
  }
}

</mosaic_0001>

<bundles_post_ra>
// kernel: tpu_custom_call.1
= control target key start
LH: loop header
LB: loop body
LE: loop exit
PB: predicated region body
PF: predicated region fallthrough
CT: control target
= control target key end

     0   :  { %6 = vsyncpa [#allocation3], 0  ;;  %s128_s0 = inlined_call_operand.hbm [shape: f32[8,128], index: 0, kind: input, shape index: {}]   ;;  %s129_s1 = inlined_call_operand.hbm [shape: f32[8,128], index: 1, kind: output, shape index: {}]  }
   0x1   :  { %7 = vsyncpa [#allocation4], 0  ;;  %s91_s6 = smov [#allocation2]   ;;  %s43_s10 = scalar_lea.hbm %s128_s0, 128 }
   0x2   :  { %s14_s7 = sshll.u32 %s91_s6, 4  ;;  %p44_p0 = scmp.ne.s32.totalorder %s128_s0, %s43_s10  ;;  %s15_s7 = int_to_ptr.vmem [resolvable:$true] %s14_s7 }
   0x3   :  { %p47_p1 = scmp.lt.u32.totalorder %s43_s10, %s128_s0 }
   0x5   :  { %p49_p2 = pnand %p47_p1, %p44_p0 }
   0x7   :  { %52 = shalt.err (!%p49_p2)
}
   0x8   :  { %s53_s15 = scalar_lea.vmem %s15_s7, 128  ;;  %p58_p4 = scmp.lt.s32.totalorder %s15_s7, %s15_s7 }
   0x9   :  { %p54_p3 = scmp.ne.s32.totalorder %s15_s7, %s53_s15  ;;  %p59_p5 = scmp.lt.s32.totalorder %s53_s15, %s53_s15 }
   0xb   :  { %p60_p6 = por %p59_p5, %p58_p4 }
   0xd   :  { %p61_p7 = pnand %p60_p6, %p54_p3 }
   0xf   :  { %64 = shalt.err (!%p61_p7)
}
  0x10   :  { %17 = dma.hbm_to_vmem [thread:$0]  %s128_s0, 128, %s15_s7, [#allocation3]  }
  0x11   :  { %87 = dma.done.wait [#allocation3], 128  }
  0x12   :  { %88 = vsyncadd [#allocation3], 4294967168  ;;  %v21_v0 = vld [vmem:[#allocation2] sm:$0xff]  ;;  %s92_s18 = smov 1   ;;  %s93_s19 = smov [#allocation5]  }
  0x13   :  { %22 = vrot.lane.b32.xlu0 %v21_v0, %s92_s18  ;;  %s31_s20 = sshll.u32 %s93_s19, 4  ;;  %s32_s20 = int_to_ptr.vmem [resolvable:$true] %s31_s20 }
  0x14   :  { %s65_s21 = scalar_lea.vmem %s32_s20, 128  ;;  %p70_p9 = scmp.lt.s32.totalorder %s32_s20, %s32_s20 }
  0x15   :  { %p66_p8 = scmp.ne.s32.totalorder %s32_s20, %s65_s21  ;;  %p71_p10 = scmp.lt.s32.totalorder %s65_s21, %s65_s21 }
  0x17   :  { %p72_p11 = por %p71_p10, %p70_p9 }
  0x19   :  { %p73_p12 = pnand %p72_p11, %p66_p8 }
  0x85   :  { %v23_v1 = vpop.permute.xlu0 %22 }
  0x86   :  { %24 = vst [vmem:[#allocation5] sm:$0xff] %v23_v1 }
  0x87   :  { %76 = shalt.err (!%p73_p12)
}
  0x88   :  { %s77_s0 = scalar_lea.hbm %s129_s1, 128 }
  0x89   :  { %p78_p13 = scmp.ne.s32.totalorder %s129_s1, %s77_s0  ;;  %p81_p0 = scmp.lt.u32.totalorder %s77_s0, %s129_s1 }
  0x8b   :  { %p83_p1 = pnand %p81_p0, %p78_p13 }
  0x8d   :  { %86 = shalt.err (!%p83_p1)
}
  0x8e   :  { %34 = dma.vmem_to_hbm [thread:$0]  %s32_s20, 128, %s129_s1, [#allocation4]  }
  0x8f   :  { %89 = dma.done.wait [#allocation4], 128  }
  0x90   :  { %90 = vsyncadd [#allocation4], 4294967168 }
  0x91   :  { %38 = vsyncpa [#allocation3], 1 }
  0x92   :  { %39 = vsyncpa [#allocation4], 1 }

</bundles_post_ra>
